<compile_context>
chip_gen: v6e
topology: v6e:2x2x1
jax: 0.10.0
libtpu: 0.0.40
codegen_flags: <defaults>
</compile_context>

<pallas_src>
import jax
import jax.numpy as jnp
import numpy as np
from jax.experimental import pallas as pl
from jax.experimental.pallas import tpu as pltpu


# ---------------------------------------------------------------------------
# Fused kernel
# ---------------------------------------------------------------------------
def _basic_block_kernel(x_ref, w1_ref, s1_ref, b1_ref,
                        w2_ref, s2_ref, b2_ref, o_ref):
    """Fused conv3x3+BN+ReLU -> conv3x3+BN -> +residual for B_TILE images.

    Shapes per grid step (WC = W*C, B = batch tile):
      x_ref  : (B, H, WC)   f32  lane-packed NHWC input (also the residual)
      w*_ref : (3*WC, WC)   bf16 banded im2col weights (kh-major rows)
      s*/b*  : (1, WC)      f32  folded-BN scale / bias, tiled over W
      o_ref  : (B, H, WC)   f32  lane-packed NHWC output

    The conv1 output never leaves VMEM; the residual is the x tile already
    resident in VMEM.  Both convs are single (B*H, 3*WC) x (3*WC, WC) MXU matmuls.
    """
    B, H, WC = o_ref.shape
    cdt = w1_ref.dtype                         # MXU operand dtype (bf16 default)
    zero_row = jnp.zeros((B, 1, WC), cdt)      # per-image zero-padding row

    def conv_bn(inp_f32, w_ref, s_ref, b_ref):
        inp = inp_f32.astype(cdt)                                   # (B, H, WC)
        # In-kernel zero padding done per image (axis=1), so stacking images into
        # one matmul cannot leak rows across image boundaries.
        up = jnp.concatenate([zero_row, inp[:, :H - 1, :]], axis=1)  # x[h-1]
        dn = jnp.concatenate([inp[:, 1:, :], zero_row], axis=1)      # x[h+1]
        patches = jnp.concatenate([up, inp, dn], axis=2)             # (B, H, 3*WC)
        patches = patches.reshape(B * H, 3 * WC)                     # leading collapse
        acc = jnp.dot(patches, w_ref[...],
                      preferred_element_type=jnp.float32)            # (B*H, WC) f32
        # Folded BatchNorm (inference): f32 epilogue (v5e has no bf16 VPU).
        return (acc * s_ref[...] + b_ref[...]).reshape(B, H, WC)

    x = x_ref[...].astype(jnp.float32)
    h1 = jnp.maximum(conv_bn(x, w1_ref, s1_ref, b1_ref), 0.0)   # stays in VMEM
    out = conv_bn(h1, w2_ref, s2_ref, b2_ref) + x               # residual add
    o_ref[...] = out.astype(o_ref.dtype)                        # lane-dense store


# ---------------------------------------------------------------------------
# Host-side parameter repacking (done once, outside the kernel)
# ---------------------------------------------------------------------------
def _fold_bn(gamma, beta, running_mean, running_var, eps=1e-5):
    scale = gamma / jnp.sqrt(running_var + eps)
    bias = beta - running_mean * scale
    return scale, bias


def _band_weights(w_hwio, width, dtype):
    """Fold HWIO 3x3 weights into the banded (3*W*Cin, W*Cout) im2col matrix for
    the lane-packed (H, W*C) layout (stride=1, pad=1, dilation=1)."""
    kh, kw, cin, cout = w_hwio.shape
    assert (kh, kw) == (3, 3), "only 3x3 kernels supported"
    w = np.asarray(w_hwio, np.float32)
    band = np.zeros((3, width * cin, width * cout), np.float32)
    for r in range(3):                 # kh
        for s in range(3):             # kw
            for wo in range(width):
                wi = wo + s - 1        # pad=1, dilation=1
                if 0 <= wi < width:
                    band[r, wi * cin:(wi + 1) * cin,
                         wo * cout:(wo + 1) * cout] = w[r, s]
    return jnp.asarray(band.reshape(3 * width * cin, width * cout), dtype)


def prepare_basic_block(params, width, compute_dtype=jnp.bfloat16):
    """One-time repack of conv weights / BN stats for the fused kernel."""
    s1, b1 = _fold_bn(params["g1"], params["b1"], params["m1"], params["v1"])
    s2, b2 = _fold_bn(params["g2"], params["b2"], params["m2"], params["v2"])
    cout = params["w1"].shape[-1]

    def tile_row(v):   # per-channel -> per-(w, c) lane row, kept in f32
        return jnp.tile(v, width).reshape(1, width * cout).astype(jnp.float32)

    return dict(
        w1=_band_weights(params["w1"], width, compute_dtype),
        w2=_band_weights(params["w2"], width, compute_dtype),
        s1=tile_row(s1), b1=tile_row(b1),
        s2=tile_row(s2), b2=tile_row(b2),
    )


# ---------------------------------------------------------------------------
# pallas_call wrappers
# ---------------------------------------------------------------------------
def _pick_batch_tile(n, h, wc, budget_bytes=4 << 20):
    """Largest divisor of n whose per-step activation working set (x/out tiles,
    double-buffered, f32 + bf16 patch operands) stays under `budget_bytes`."""
    per_image = h * wc * (4 * 4 + 2 * 3 * 2)   # rough: 4 f32 copies + 2 bf16 patch sets
    bt = 1
    for d in range(1, n + 1):
        if n % d == 0 and d * per_image <= budget_bytes:
            bt = d
    return bt


def basic_block_forward_packed(x_packed, prep):
    """Fused BasicBlock on lane-packed NHWC activations: (N, H, W*C) -> same."""
    N, H, WC = x_packed.shape
    KWC = prep["w1"].shape[0]                  # 3 * W * Cin
    BT = _pick_batch_tile(N, H, WC)            # images per grid step

    grid_spec = pltpu.PrefetchScalarGridSpec(
        num_scalar_prefetch=0,
        grid=(N // BT,),
        in_specs=[
            pl.BlockSpec((BT, H, WC), lambda n: (n, 0, 0)),
            # Grid-invariant weight / scale / bias blocks (index_map constant in n,
            # so Pallas keeps them resident instead of re-DMAing each step).
            pl.BlockSpec((KWC, WC), lambda n: (0, 0)),
            pl.BlockSpec((1, WC), lambda n: (0, 0)),
            pl.BlockSpec((1, WC), lambda n: (0, 0)),
            pl.BlockSpec((KWC, WC), lambda n: (0, 0)),
            pl.BlockSpec((1, WC), lambda n: (0, 0)),
            pl.BlockSpec((1, WC), lambda n: (0, 0)),
        ],
        out_specs=pl.BlockSpec((BT, H, WC), lambda n: (n, 0, 0)),
    )
    return pl.pallas_call(
        _basic_block_kernel,
        out_shape=jax.ShapeDtypeStruct((N, H, WC), x_packed.dtype),
        grid_spec=grid_spec,
        compiler_params=pltpu.CompilerParams(
            dimension_semantics=("parallel",),
            # Working set is well under the budget at demo size; explicit limit
            # with headroom (fits v5e/v6e/v7x scoped-VMEM defaults).
            vmem_limit_bytes=32 * 1024 * 1024,
        ),
    )(x_packed, prep["w1"], prep["s1"], prep["b1"],
      prep["w2"], prep["s2"], prep["b2"])


@jax.jit
def basic_block_forward_nchw(x_nchw, prep):
    """PyTorch-layout convenience wrapper (NCHW in / NCHW out).  A real pipeline
    keeps activations in the packed NHWC layout end-to-end and skips these
    boundary transposes entirely."""
    N, C, H, W = x_nchw.shape
    x_packed = jnp.transpose(x_nchw, (0, 2, 3, 1)).reshape(N, H, W * C)
    out = basic_block_forward_packed(x_packed, prep)
    return jnp.transpose(out.reshape(N, H, W, C), (0, 3, 1, 2))


# ---------------------------------------------------------------------------
# Parameter init + pure-JAX reference
# ---------------------------------------------------------------------------
def init_basic_block_params(key, inplanes, planes):
    ks = jax.random.split(key, 10)
    # PyTorch Conv2d weights are (Cout, Cin, kh, kw); convert to HWIO.
    w1 = 0.1 * jax.random.normal(ks[0], (planes, inplanes, 3, 3), jnp.float32)
    w2 = 0.1 * jax.random.normal(ks[1], (planes, planes, 3, 3), jnp.float32)
    return dict(
        w1=jnp.transpose(w1, (2, 3, 1, 0)),
        w2=jnp.transpose(w2, (2, 3, 1, 0)),
        g1=jax.random.uniform(ks[2], (planes,), jnp.float32, 0.5, 1.5),
        b1=0.1 * jax.random.normal(ks[3], (planes,), jnp.float32),
        m1=0.1 * jax.random.normal(ks[4], (planes,), jnp.float32),
        v1=jax.random.uniform(ks[5], (planes,), jnp.float32, 0.5, 1.5),
        g2=jax.random.uniform(ks[6], (planes,), jnp.float32, 0.5, 1.5),
        b2=0.1 * jax.random.normal(ks[7], (planes,), jnp.float32),
        m2=0.1 * jax.random.normal(ks[8], (planes,), jnp.float32),
        v2=jax.random.uniform(ks[9], (planes,), jnp.float32, 0.5, 1.5),
    )


def _reference_forward(x_nchw, params, compute_dtype=jnp.float32):
    """Pure-JAX reference (lax.conv).  `compute_dtype` mirrors the kernel's MXU
    operand precision policy (operands cast down, f32 accumulation/epilogue)."""
    s1, b1 = _fold_bn(params["g1"], params["b1"], params["m1"], params["v1"])
    s2, b2 = _fold_bn(params["g2"], params["b2"], params["m2"], params["v2"])
    x = jnp.transpose(x_nchw, (0, 2, 3, 1))

    def conv(h, w):
        return jax.lax.conv_general_dilated(
            h.astype(compute_dtype), w.astype(compute_dtype),
            window_strides=(1, 1), padding=((1, 1), (1, 1)),
            dimension_numbers=("NHWC", "HWIO", "NHWC"),
            preferred_element_type=jnp.float32)

    h = conv(x, params["w1"]) * s1 + b1
    h = jnp.maximum(h, 0.0)
    h = conv(h, params["w2"]) * s2 + b2
    h = h + x                               # NOTE: no final ReLU in this module
    return jnp.transpose(h, (0, 3, 1, 2))


# ---------------------------------------------------------------------------
# Demo / correctness check
# ---------------------------------------------------------------------------
if __name__ == "__main__":
    # inplanes == planes == 8, H = W = 16  ->  W*C = 128 lanes (lane-dense).
    N, C, H, W = 2, 8, 16, 16
    key = jax.random.PRNGKey(0)
    kx, kp = jax.random.split(key)
    x = jax.random.normal(kx, (N, C, H, W), jnp.float32)
    params = init_basic_block_params(kp, C, C)

    # Performance configuration: bf16 MXU operands, f32 accumulation/epilogue.
    prep = prepare_basic_block(params, W, compute_dtype=jnp.bfloat16)
    out = jax.block_until_ready(basic_block_forward_nchw(x, prep))

    # 1) Structural correctness: compare against a reference using the *same*
    #    operand-precision policy (bf16 operands, f32 accumulation).
    ref_bf16 = jax.block_until_ready(
        _reference_forward(x, params, compute_dtype=jnp.bfloat16))
    np.testing.assert_allclose(np.asarray(out), np.asarray(ref_bf16),
                               rtol=2e-2, atol=2e-2)

    # 2) Semantic fidelity: the mixed-precision output stays close to the exact
    #    f32 module forward (loose tolerance bounds the bf16 operand drift).
    ref_f32 = jax.block_until_ready(
        _reference_forward(x, params, compute_dtype=jnp.float32))
    np.testing.assert_allclose(np.asarray(out), np.asarray(ref_f32),
                               rtol=1e-1, atol=1e-1)

    print("KERNEL_OK")
</pallas_src>

<mosaic_0001>
module attributes {stable_mosaic.version = 11 : i64} {
  func.func @_basic_block_kernel(%arg0: i32, %arg1: memref<2x16x128xf32, #tpu.memory_space<vmem>>, %arg2: memref<384x128xbf16, #tpu.memory_space<vmem>>, %arg3: memref<1x128xf32, #tpu.memory_space<vmem>>, %arg4: memref<1x128xf32, #tpu.memory_space<vmem>>, %arg5: memref<384x128xbf16, #tpu.memory_space<vmem>>, %arg6: memref<1x128xf32, #tpu.memory_space<vmem>>, %arg7: memref<1x128xf32, #tpu.memory_space<vmem>>, %arg8: memref<2x16x128xf32, #tpu.memory_space<vmem>>) attributes {dimension_semantics = [#tpu.dimension_semantics<parallel>], iteration_bounds = array<i64: 1>, scalar_prefetch = 0 : i64, scratch_operands = 0 : i64, tpu.core_type = #tpu.core_type<tc>, window_params = [{transform_indices = @transform_0, window_bounds = array<i64: 2, 16, 128>}, {pipeline_mode = #tpu.pipeline_mode<synchronous>, transform_indices = @transform_1, window_bounds = array<i64: 384, 128>}, {pipeline_mode = #tpu.pipeline_mode<synchronous>, transform_indices = @transform_2, window_bounds = array<i64: 1, 128>}, {pipeline_mode = #tpu.pipeline_mode<synchronous>, transform_indices = @transform_3, window_bounds = array<i64: 1, 128>}, {pipeline_mode = #tpu.pipeline_mode<synchronous>, transform_indices = @transform_4, window_bounds = array<i64: 384, 128>}, {pipeline_mode = #tpu.pipeline_mode<synchronous>, transform_indices = @transform_5, window_bounds = array<i64: 1, 128>}, {pipeline_mode = #tpu.pipeline_mode<synchronous>, transform_indices = @transform_6, window_bounds = array<i64: 1, 128>}, {transform_indices = @transform_7, window_bounds = array<i64: 2, 16, 128>}]} {
    %cst = arith.constant 0.000000e+00 : bf16
    %0 = vector.broadcast %cst : bf16 to vector<2x1x128xbf16>
    %c0 = arith.constant 0 : index
    %c0_0 = arith.constant 0 : index
    %c0_1 = arith.constant 0 : index
    %1 = vector.load %arg1[%c0, %c0_0, %c0_1] : memref<2x16x128xf32, #tpu.memory_space<vmem>>, vector<2x16x128xf32>
    %2 = arith.truncf %1 : vector<2x16x128xf32> to vector<2x16x128xbf16>
    %3 = vector.extract_strided_slice %2 {offsets = [0, 0, 0], sizes = [2, 15, 128], strides = [1, 1, 1]} : vector<2x16x128xbf16> to vector<2x15x128xbf16>
    %4 = tpu.concatenate %0, %3 in 1 : vector<2x1x128xbf16>, vector<2x15x128xbf16> -> vector<2x16x128xbf16>
    %5 = vector.extract_strided_slice %2 {offsets = [0, 1, 0], sizes = [2, 15, 128], strides = [1, 1, 1]} : vector<2x16x128xbf16> to vector<2x15x128xbf16>
    %6 = tpu.concatenate %5, %0 in 1 : vector<2x15x128xbf16>, vector<2x1x128xbf16> -> vector<2x16x128xbf16>
    %7 = tpu.concatenate %4, %2, %6 in 2 : vector<2x16x128xbf16>, vector<2x16x128xbf16>, vector<2x16x128xbf16> -> vector<2x16x384xbf16>
    %8 = vector.shape_cast %7 : vector<2x16x384xbf16> to vector<32x384xbf16>
    %c0_2 = arith.constant 0 : index
    %c0_3 = arith.constant 0 : index
    %9 = vector.load %arg2[%c0_2, %c0_3] : memref<384x128xbf16, #tpu.memory_space<vmem>>, vector<384x128xbf16>
    %cst_4 = arith.constant dense<0.000000e+00> : vector<32x128xf32>
    %10 = tpu.matmul %8, %9, %cst_4 {dimension_numbers = #tpu.dot_dimension_numbers<[1], [0], [0], [1], [0, 0, 1, 1], [], []>} : vector<32x384xbf16>, vector<384x128xbf16>, vector<32x128xf32> -> vector<32x128xf32>
    %c0_5 = arith.constant 0 : index
    %c0_6 = arith.constant 0 : index
    %11 = vector.load %arg3[%c0_5, %c0_6] : memref<1x128xf32, #tpu.memory_space<vmem>>, vector<1x128xf32>
    %12 = vector.broadcast %11 : vector<1x128xf32> to vector<32x128xf32>
    %13 = arith.mulf %10, %12 : vector<32x128xf32>
    %c0_7 = arith.constant 0 : index
    %c0_8 = arith.constant 0 : index
    %14 = vector.load %arg4[%c0_7, %c0_8] : memref<1x128xf32, #tpu.memory_space<vmem>>, vector<1x128xf32>
    %15 = vector.broadcast %14 : vector<1x128xf32> to vector<32x128xf32>
    %16 = arith.addf %13, %15 : vector<32x128xf32>
    %17 = vector.shape_cast %16 : vector<32x128xf32> to vector<2x16x128xf32>
    %cst_9 = arith.constant 0.000000e+00 : f32
    %18 = vector.broadcast %cst_9 : f32 to vector<2x16x128xf32>
    %19 = arith.maximumf %17, %18 : vector<2x16x128xf32>
    %20 = arith.truncf %19 : vector<2x16x128xf32> to vector<2x16x128xbf16>
    %21 = vector.extract_strided_slice %20 {offsets = [0, 0, 0], sizes = [2, 15, 128], strides = [1, 1, 1]} : vector<2x16x128xbf16> to vector<2x15x128xbf16>
    %22 = tpu.concatenate %0, %21 in 1 : vector<2x1x128xbf16>, vector<2x15x128xbf16> -> vector<2x16x128xbf16>
    %23 = vector.extract_strided_slice %20 {offsets = [0, 1, 0], sizes = [2, 15, 128], strides = [1, 1, 1]} : vector<2x16x128xbf16> to vector<2x15x128xbf16>
    %24 = tpu.concatenate %23, %0 in 1 : vector<2x15x128xbf16>, vector<2x1x128xbf16> -> vector<2x16x128xbf16>
    %25 = tpu.concatenate %22, %20, %24 in 2 : vector<2x16x128xbf16>, vector<2x16x128xbf16>, vector<2x16x128xbf16> -> vector<2x16x384xbf16>
    %26 = vector.shape_cast %25 : vector<2x16x384xbf16> to vector<32x384xbf16>
    %c0_10 = arith.constant 0 : index
    %c0_11 = arith.constant 0 : index
    %27 = vector.load %arg5[%c0_10, %c0_11] : memref<384x128xbf16, #tpu.memory_space<vmem>>, vector<384x128xbf16>
    %cst_12 = arith.constant dense<0.000000e+00> : vector<32x128xf32>
    %28 = tpu.matmul %26, %27, %cst_12 {dimension_numbers = #tpu.dot_dimension_numbers<[1], [0], [0], [1], [0, 0, 1, 1], [], []>} : vector<32x384xbf16>, vector<384x128xbf16>, vector<32x128xf32> -> vector<32x128xf32>
    %c0_13 = arith.constant 0 : index
    %c0_14 = arith.constant 0 : index
    %29 = vector.load %arg6[%c0_13, %c0_14] : memref<1x128xf32, #tpu.memory_space<vmem>>, vector<1x128xf32>
    %30 = vector.broadcast %29 : vector<1x128xf32> to vector<32x128xf32>
    %31 = arith.mulf %28, %30 : vector<32x128xf32>
    %c0_15 = arith.constant 0 : index
    %c0_16 = arith.constant 0 : index
    %32 = vector.load %arg7[%c0_15, %c0_16] : memref<1x128xf32, #tpu.memory_space<vmem>>, vector<1x128xf32>
    %33 = vector.broadcast %32 : vector<1x128xf32> to vector<32x128xf32>
    %34 = arith.addf %31, %33 : vector<32x128xf32>
    %35 = vector.shape_cast %34 : vector<32x128xf32> to vector<2x16x128xf32>
    %36 = arith.addf %35, %1 : vector<2x16x128xf32>
    %c0_17 = arith.constant 0 : index
    %c0_18 = arith.constant 0 : index
    %c0_19 = arith.constant 0 : index
    %37 = vector.load %arg8[%c0_17, %c0_18, %c0_19] : memref<2x16x128xf32, #tpu.memory_space<vmem>>, vector<2x16x128xf32>
    tpu.vector_store %arg8[%c0_17, %c0_18, %c0_19], %36 {strides = array<i32>} : memref<2x16x128xf32, #tpu.memory_space<vmem>>, vector<2x16x128xf32>,
    return
  }
  func.func @transform_0(%arg0: i32) -> (i32, i32, i32) {
    %c0_i32 = arith.constant 0 : i32
    %c0_i32_0 = arith.constant 0 : i32
    %c0_i32_1 = arith.constant 0 : i32
    return %arg0, %c0_i32, %c0_i32_0 : i32, i32, i32
  }
  func.func @transform_1(%arg0: i32) -> (i32, i32) {
    %c0_i32 = arith.constant 0 : i32
    %c0_i32_0 = arith.constant 0 : i32
    %c0_i32_1 = arith.constant 0 : i32
    return %c0_i32, %c0_i32_0 : i32, i32
  }
  func.func @transform_2(%arg0: i32) -> (i32, i32) {
    %c0_i32 = arith.constant 0 : i32
    %c0_i32_0 = arith.constant 0 : i32
    %c0_i32_1 = arith.constant 0 : i32
    return %c0_i32, %c0_i32_0 : i32, i32
  }
  func.func @transform_3(%arg0: i32) -> (i32, i32) {
    %c0_i32 = arith.constant 0 : i32
    %c0_i32_0 = arith.constant 0 : i32
    %c0_i32_1 = arith.constant 0 : i32
    return %c0_i32, %c0_i32_0 : i32, i32
  }
  func.func @transform_4(%arg0: i32) -> (i32, i32) {
    %c0_i32 = arith.constant 0 : i32
    %c0_i32_0 = arith.constant 0 : i32
    %c0_i32_1 = arith.constant 0 : i32
    return %c0_i32, %c0_i32_0 : i32, i32
  }
  func.func @transform_5(%arg0: i32) -> (i32, i32) {
    %c0_i32 = arith.constant 0 : i32
    %c0_i32_0 = arith.constant 0 : i32
    %c0_i32_1 = arith.constant 0 : i32
    return %c0_i32, %c0_i32_0 : i32, i32
  }
  func.func @transform_6(%arg0: i32) -> (i32, i32) {
    %c0_i32 = arith.constant 0 : i32
    %c0_i32_0 = arith.constant 0 : i32
    %c0_i32_1 = arith.constant 0 : i32
    return %c0_i32, %c0_i32_0 : i32, i32
  }
  func.func @transform_7(%arg0: i32) -> (i32, i32, i32) {
    %c0_i32 = arith.constant 0 : i32
    %c0_i32_0 = arith.constant 0 : i32
    %c0_i32_1 = arith.constant 0 : i32
    return %arg0, %c0_i32, %c0_i32_0 : i32, i32, i32
  }
}

</mosaic_0001>

<bundles_post_ra>
// kernel: basic_block_forward_nchw.1
= control target key start
LH: loop header
LB: loop body
LE: loop exit
PB: predicated region body
PF: predicated region fallthrough
CT: control target
= control target key end

     0   :  { %vm60_vm0 = vcmask 1047552   ;;  %vm61_vm1 = vsmask.f32 7424  ;;  %vm49_vm2 = vcmask 1040384   ;;  %vm50_vm3 = vsmask.f32 256  ;;  %s1213_s1 = inlined_call_operand.vmem [shape: bf16[384,128], index: 1, kind: input, shape index: {}]   ;;  %s1214_s0 = inlined_call_operand.vmem [shape: f32[2,16,128], index: 0, kind: input, shape index: {}]   ;;  %s1215_s4 = inlined_call_operand.vmem [shape: bf16[384,128], index: 4, kind: input, shape index: {}]   ;;  %s1216_s2 = inlined_call_operand.vmem [shape: f32[1,128], index: 2, kind: input, shape index: {}]   ;;  %s1217_s3 = inlined_call_operand.vmem [shape: f32[1,128], index: 3, kind: input, shape index: {}]   ;;  %s1218_s5 = inlined_call_operand.vmem [shape: f32[1,128], index: 5, kind: input, shape index: {}]   ;;  %s1219_s6 = inlined_call_operand.vmem [shape: f32[1,128], index: 6, kind: input, shape index: {}]   ;;  %s1220_s7 = inlined_call_operand.vmem [shape: f32[2,16,128], index: 7, kind: output, shape index: {}]  }
   0x1   :  { %v901_v0 = vld [vmem:[%s1213_s1 + $0x78] sm:$0xff]   ;;  %v904_v3 = vld [vmem:[%s1213_s1 + $0x70] sm:$0xff]   ;;  %v907_v6 = vld [vmem:[%s1213_s1 + $0x68] sm:$0xff]  }
   0x2   :  { %v902_v1 = vld [vmem:[%s1213_s1 + $0xb8] sm:$0xff]   ;;  %785 = vmatprep.subr.bf16.mxu0 %v901_v0  ;;  %v905_v4 = vld [vmem:[%s1213_s1 + $0xb0] sm:$0xff]   ;;  %v908_v7 = vld [vmem:[%s1213_s1 + $0xa8] sm:$0xff]  }
   0x3   :  { %v903_v2 = vld [vmem:[%s1213_s1 + $0x38] sm:$0xff]   ;;  %861 = vmatprep.subr.bf16.mxu1 %v902_v1  ;;  %v906_v5 = vld [vmem:[%s1213_s1 + $0x30] sm:$0xff]   ;;  %v909_v8 = vld [vmem:[%s1213_s1 + $0x28] sm:$0xff]  }
   0x4   :  { %786 = vmatpush3.bf16.msra.mxu0 %v903_v2  ;;  %862 = vmatpush3.bf16.msra.mxu1 %v902_v1  ;;  %v910_v9 = vld [vmem:[%s1213_s1 + $0x60] sm:$0xff]   ;;  %v913_v12 = vld [vmem:[%s1213_s1 + $0x58] sm:$0xff]   ;;  %v916_v15 = vld [vmem:[%s1213_s1 + $0x50] sm:$0xff]  }
   0x5   :  { %787 = vmatprep.subr.bf16.mxu0 %v904_v3  ;;  %863 = vmatprep.subr.bf16.mxu1 %v905_v4  ;;  %v911_v10 = vld [vmem:[%s1213_s1 + $0xa0] sm:$0xff]   ;;  %v914_v13 = vld [vmem:[%s1213_s1 + $0x98] sm:$0xff]   ;;  %v917_v16 = vld [vmem:[%s1213_s1 + $0x90] sm:$0xff]  }
   0x6   :  { %v912_v11 = vld [vmem:[%s1213_s1 + $0x20] sm:$0xff]   ;;  %v915_v14 = vld [vmem:[%s1213_s1 + $0x18] sm:$0xff]   ;;  %v918_v17 = vld [vmem:[%s1213_s1 + $0x10] sm:$0xff]  }
   0x7   :  { %v919_v18 = vld [vmem:[%s1213_s1 + $0x48] sm:$0xff]   ;;  %v922_v21 = vld [vmem:[%s1213_s1 + $0x40] sm:$0xff]   ;;  %v1073_v26 = vld [vmem:[%s1214_s0 + $0x10] sm:$0xff] }
   0x8   :  { %788 = vmatpush3.bf16.msra.mxu0 %v906_v5  ;;  %864 = vmatpush3.bf16.msra.mxu1 %v905_v4  ;;  %v920_v19 = vld [vmem:[%s1213_s1 + $0x88] sm:$0xff]   ;;  %v1058_v22 = vld [vmem:[%s1214_s0] sm:$0xff]  ;;  %v1078_v27 = vld [vmem:[%s1214_s0 + $0x18] sm:$0xff] }
   0x9   :  { %789 = vmatprep.subr.bf16.mxu0 %v907_v6  ;;  %865 = vmatprep.subr.bf16.mxu1 %v908_v7  ;;  %v921_v20 = vld [vmem:[%s1213_s1 + $0x8] sm:$0xff]   ;;  %v923_v24 = vld [vmem:[%s1213_s1 + $0x80] sm:$0xff]   ;;  %v32_v28 = vpack.c.bf16 %v1078_v27, %v1073_v26  ;;  %v925_v34 = vld [vmem:[%s1215_s4 + $0x78] sm:$0xff]  }
   0xa   :  { %v1063_v23 = vld [vmem:[%s1214_s0 + $0x8] sm:$0xff]  ;;  %v924_v31 = vld [vmem:[%s1213_s1] sm:$0xff]   ;;  %vm1090_vm4 = vmand %vm60_vm0, %vm61_vm1 }
   0xb   :  { %v31_v25 = vpack.c.bf16 %v1063_v23, %v1058_v22  ;;  %v41_v32 = vshrl.u32 %v32_v28, 16  ;;  %v44_v33 = vshll.u32 %v32_v28, 16  ;;  %vm1096_vm5 = vmand %vm49_vm2, %vm50_vm3  ;;  %v926_v41 = vld [vmem:[%s1215_s4 + $0x38] sm:$0xff]   ;;  %v927_v44 = vld [vmem:[%s1215_s4 + $0x70] sm:$0xff]  }
   0xc   :  { %790 = vmatpush3.bf16.msra.mxu0 %v909_v8  ;;  %866 = vmatpush3.bf16.msra.mxu1 %v908_v7  ;;  %v928_v51 = vld [vmem:[%s1215_s4 + $0x30] sm:$0xff]   ;;  %v929_v52 = vld [vmem:[%s1215_s4 + $0x68] sm:$0xff]   ;;  %v930_v53 = vld [vmem:[%s1215_s4 + $0xb8] sm:$0xff]  }
   0xd   :  { %791 = vmatprep.subr.bf16.mxu0 %v910_v9  ;;  %867 = vmatprep.subr.bf16.mxu1 %v911_v10  ;;  %v34_v29 = vshrl.u32 %v31_v25, 16  ;;  %v37_v30 = vshll.u32 %v31_v25, 16  ;;  %v56_v39 = vrot.slane %v44_v33, 1  ;;  %v43_v40 = vrot.slane %v41_v32, 7  ;;  %v931_v54 = vld [vmem:[%s1215_s4 + $0x28] sm:$0xff]   ;;  %v932_v55 = vld [vmem:[%s1215_s4 + $0x60] sm:$0xff]  }
   0xe   :  { %289 = vmatprep.mubr.bf16.mxu0 %v31_v25  ;;  %v933_v56 = vld [vmem:[%s1215_s4 + $0xb0] sm:$0xff]   ;;  %v934_v57 = vld [vmem:[%s1215_s4 + $0x20] sm:$0xff]   ;;  %v935_v58 = vld [vmem:[%s1215_s4 + $0x58] sm:$0xff]  }
   0xf   :  { %v54_v35 = vrot.slane %v37_v30, 1  ;;  %v36_v37 = vrot.slane %v34_v29, 7  ;;  %v57_v45 = vor.u32 %v56_v39, %v41_v32  ;;  %v46_v46 = vor.u32 %v44_v33, %v43_v40  ;;  %v936_v59 = vld [vmem:[%s1215_s4 + $0xa8] sm:$0xff]   ;;  %v937_v60 = vld [vmem:[%s1215_s4 + $0x18] sm:$0xff]   ;;  %v938_v61 = vld [vmem:[%s1215_s4 + $0x50] sm:$0xff]  }
  0x10   :  { %792 = vmatpush3.bf16.msra.mxu0 %v912_v11  ;;  %868 = vmatpush3.bf16.msra.mxu1 %v911_v10  ;;  %v939_v62 = vld [vmem:[%s1215_s4 + $0xa0] sm:$0xff]   ;;  %v940_v63 = vld [vmem:[%s1215_s4 + $0x10] sm:$0xff]   ;;  %v941_v0 = vld [vmem:[%s1215_s4 + $0x48] sm:$0xff]  }
  0x11   :  { %793 = vmatprep.subr.bf16.mxu0 %v913_v12  ;;  %869 = vmatprep.subr.bf16.mxu1 %v914_v13  ;;  %v55_v42 = vor.u32 %v54_v35, %v34_v29  ;;  %v39_v43 = vor.u32 %v37_v30, %v36_v37  ;;  %v64_v49 = vsel %vm1090_vm4, %v57_v45, 0  ;;  %v53_v50 = vsel %vm1096_vm5, 0, %v46_v46  ;;  %v942_v1 = vld [vmem:[%s1215_s4 + $0x98] sm:$0xff]   ;;  %v943_v2 = vld [vmem:[%s1215_s4 + $0x8] sm:$0xff]   ;;  %v944_v3 = vld [vmem:[%s1215_s4 + $0x40] sm:$0xff]  }
  0x12   :  { %v945_v4 = vld [vmem:[%s1215_s4 + $0x90] sm:$0xff]   ;;  %v946_v5 = vld [vmem:[%s1215_s4] sm:$0xff]   ;;  %v947_v6 = vld [vmem:[%s1215_s4 + $0x88] sm:$0xff]  }
  0x13   :  { %v63_v47 = vsel %vm1090_vm4, %v55_v42, 0  ;;  %v52_v48 = vsel %vm1096_vm5, 0, %v39_v43  ;;  %v948_v7 = vld [vmem:[%s1215_s4 + $0x80] sm:$0xff]  }
  0x14   :  { %794 = vmatpush3.bf16.msra.mxu0 %v915_v14  ;;  %870 = vmatpush3.bf16.msra.mxu1 %v914_v13  ;;  %v757_v13 = vld [vmem:[%s1216_s2] ss:$0 sm:$0xff] }
  0x15   :  { %795 = vmatprep.subr.bf16.mxu0 %v916_v15  ;;  %871 = vmatprep.subr.bf16.mxu1 %v917_v16  ;;  %v784_v36 = vld [vmem:[%s1219_s6] ss:$0 sm:$0xff] }
  0x16   :  { %877 = vmatprep.mubr.bf16.mxu1 %v63_v47 }
  0x18   :  { %796 = vmatpush3.bf16.msra.mxu0 %v918_v17  ;;  %872 = vmatpush3.bf16.msra.mxu1 %v917_v16 }
  0x19   :  { %797 = vmatprep.subr.bf16.mxu0 %v919_v18  ;;  %873 = vmatprep.subr.bf16.mxu1 %v920_v19 }
  0x1c   :  { %798 = vmatpush3.bf16.msra.mxu0 %v921_v20  ;;  %874 = vmatpush3.bf16.msra.mxu1 %v920_v19  ;;  %v758_v20 = vld [vmem:[%s1217_s3] ss:$0 sm:$0xff] }
  0x1d   :  { %799 = vmatprep.subr.bf16.mxu0 %v922_v21  ;;  %875 = vmatprep.subr.bf16.mxu1 %v923_v24 }
  0x20   :  { %800 = vmatpush3.bf16.msra.mxu0 %v924_v31  ;;  %876 = vmatpush3.bf16.msra.mxu1 %v923_v24 }
  0x21   :  { %823 = vmatprep.subr.bf16.mxu0 %v925_v34  ;;  %881 = vmatprep.subr.bf16.mxu1 %v930_v53 }
  0x23   :  { %290 = vmatmul.mubr.bf16.vlgmr.msra.gmra.mxu0 %v52_v48  ;;  %878 = vmatmul.mubr.bf16.vlgmr.msra.gmra.mxu1 %v64_v49 }
  0x24   :  { %297 = vmatprep.mubr.bf16.mxu0 %v32_v28  ;;  %824 = vmatpush3.bf16.msra.mxu0 %v926_v41 }
  0x25   :  { %825 = vmatprep.subr.bf16.mxu0 %v927_v44  ;;  %882 = vmatpush3.bf16.msra.mxu1 %v930_v53 }
  0x26   :  { %883 = vmatprep.subr.bf16.mxu1 %v933_v56 }
  0x28   :  { %826 = vmatpush3.bf16.msra.mxu0 %v928_v51 }
  0x29   :  { %827 = vmatprep.subr.bf16.mxu0 %v929_v52  ;;  %884 = vmatpush3.bf16.msra.mxu1 %v933_v56 }
  0x2a   :  { %885 = vmatprep.subr.bf16.mxu1 %v936_v59 }
  0x2b   :  { %298 = vmatmul.mubr.bf16.gmra.mxu0 %v53_v50 }
  0x2c   :  { %828 = vmatpush3.bf16.msra.mxu0 %v931_v54 }
  0x2d   :  { %829 = vmatprep.subr.bf16.mxu0 %v932_v55  ;;  %886 = vmatpush3.bf16.msra.mxu1 %v936_v59 }
  0x2e   :  { %887 = vmatprep.subr.bf16.mxu1 %v939_v62 }
  0x30   :  { %830 = vmatpush3.bf16.msra.mxu0 %v934_v57 }
  0x31   :  { %831 = vmatprep.subr.bf16.mxu0 %v935_v58  ;;  %888 = vmatpush3.bf16.msra.mxu1 %v939_v62 }
  0x32   :  { %889 = vmatprep.subr.bf16.mxu1 %v942_v1 }
  0x34   :  { %832 = vmatpush3.bf16.msra.mxu0 %v937_v60 }
  0x35   :  { %833 = vmatprep.subr.bf16.mxu0 %v938_v61  ;;  %890 = vmatpush3.bf16.msra.mxu1 %v942_v1 }
  0x36   :  { %891 = vmatprep.subr.bf16.mxu1 %v945_v4 }
  0x38   :  { %834 = vmatpush3.bf16.msra.mxu0 %v940_v63 }
  0x39   :  { %835 = vmatprep.subr.bf16.mxu0 %v941_v0  ;;  %892 = vmatpush3.bf16.msra.mxu1 %v945_v4 }
  0x3a   :  { %893 = vmatprep.subr.bf16.mxu1 %v947_v6 }
  0x3c   :  { %836 = vmatpush3.bf16.msra.mxu0 %v943_v2 }
  0x3d   :  { %837 = vmatprep.subr.bf16.mxu0 %v944_v3  ;;  %894 = vmatpush3.bf16.msra.mxu1 %v947_v6 }
  0x3e   :  { %895 = vmatprep.subr.bf16.mxu1 %v948_v7 }
  0x40   :  { %838 = vmatpush3.bf16.msra.mxu0 %v946_v5 }
  0x41   :  { %896 = vmatpush3.bf16.msra.mxu1 %v948_v7 }
  0xe3   :  { %v801_v8 = vpop.f32.mrf.mxu0  ;;  %v879_v9 = vpop.f32.mrf.mxu1 }
  0xe5   :  { %v802_v10 = vpop.f32.mrf.mxu0  ;;  %v340_v11 = vpop.f32.mrf.mxu1 }
  0xe6   :  { %v803_v12 = vadd.f32 %v802_v10, %v801_v8  ;;  %v783_v10 = vld [vmem:[%s1218_s5] ss:$0 sm:$0xff] }
  0xe7   :  { %v804_v14 = vpop.f32.mrf.mxu0  ;;  %v880_v15 = vpop.f32.mrf.mxu1 }
  0xe8   :  { %v341_v16 = vadd.f32 %v803_v12, %v340_v11 }
  0xe9   :  { %v805_v17 = vpop.f32.mrf.mxu0  ;;  %v343_v21 = vpop.f32.mrf.mxu1 }
  0xea   :  { %v362_v18 = vmul.f32 %v757_v13, %v341_v16  ;;  %v806_v19 = vadd.f32 %v805_v17, %v804_v14 }
  0xeb   :  { %v807_v24 = vpop.f32.mrf.mxu0 }
  0xec   :  { %v344_v25 = vadd.f32 %v806_v19, %v343_v21  ;;  %v373_v29 = vadd.f32 %v758_v20, %v362_v18 }
  0xed   :  { %v808_v28 = vpop.f32.mrf.mxu0 }
  0xee   :  { %v363_v30 = vmul.f32 %v757_v13, %v344_v25  ;;  %v809_v31 = vadd.f32 %v808_v28, %v807_v24  ;;  %v377_v37 = vmax.f32 %v373_v29, 0.0 }
  0xef   :  { %v810_v32 = vpop.f32.mrf.mxu0 }
  0xf0   :  { %v374_v33 = vadd.f32 %v758_v20, %v363_v30  ;;  %v349_v34 = vadd.f32 %v879_v9, %v809_v31 }
  0xf1   :  { %v811_v35 = vpop.f32.mrf.mxu0 }
  0xf2   :  { %v378_v39 = vmax.f32 %v374_v33, 0.0  ;;  %v364_v40 = vmul.f32 %v757_v13, %v349_v34  ;;  %v812_v41 = vadd.f32 %v811_v35, %v810_v32 }
  0xf4   :  { %v352_v42 = vadd.f32 %v880_v15, %v812_v41  ;;  %v381_v43 = vpack.c.bf16 %v378_v39, %v377_v37  ;;  %v375_v47 = vadd.f32 %v758_v20, %v364_v40 }
  0xf6   :  { %v365_v44 = vmul.f32 %v757_v13, %v352_v42  ;;  %v384_v45 = vshrl.u32 %v381_v43, 16  ;;  %v387_v46 = vshll.u32 %v381_v43, 16  ;;  %633 = vmatprep.mubr.bf16.mxu0 %v381_v43  ;;  %v379_v53 = vmax.f32 %v375_v47, 0.0 }
  0xf8   :  { %v386_v48 = vrot.slane %v384_v45, 7  ;;  %v401_v49 = vrot.slane %v387_v46, 1  ;;  %v376_v50 = vadd.f32 %v758_v20, %v365_v44 }
  0xfa   :  { %v389_v51 = vor.u32 %v387_v46, %v386_v48  ;;  %v402_v52 = vor.u32 %v401_v49, %v384_v45  ;;  %v380_v54 = vmax.f32 %v376_v50, 0.0 }
  0xfc   :  { %v399_v55 = vsel %vm1096_vm5, 0, %v389_v51  ;;  %v407_v56 = vsel %vm1090_vm4, %v402_v52, 0  ;;  %v382_v57 = vpack.c.bf16 %v380_v54, %v379_v53 }
  0xfd   :  { %634 = vmatmul.mubr.bf16.vlgmr.msra.gmra.mxu0 %v399_v55  ;;  %897 = vmatprep.mubr.bf16.mxu1 %v407_v56 }
  0xfe   :  { %641 = vmatprep.mubr.bf16.mxu0 %v382_v57  ;;  %v391_v58 = vshrl.u32 %v382_v57, 16  ;;  %v394_v59 = vshll.u32 %v382_v57, 16 }
 0x100   :  { %v393_v60 = vrot.slane %v391_v58, 7  ;;  %v403_v61 = vrot.slane %v394_v59, 1 }
 0x102   :  { %v396_v62 = vor.u32 %v394_v59, %v393_v60  ;;  %v404_v63 = vor.u32 %v403_v61, %v391_v58 }
 0x104   :  { %v400_v0 = vsel %vm1096_vm5, 0, %v396_v62  ;;  %v408_v1 = vsel %vm1090_vm4, %v404_v63, 0 }
 0x105   :  { %642 = vmatmul.mubr.bf16.gmra.mxu0 %v400_v0  ;;  %898 = vmatmul.mubr.bf16.vlgmr.msra.gmra.mxu1 %v408_v1 }
 0x1bd   :  { %v839_v2 = vpop.f32.mrf.mxu0 }
 0x1bf   :  { %v840_v3 = vpop.f32.mrf.mxu0 }
 0x1c0   :  { %v841_v8 = vadd.f32 %v840_v3, %v839_v2 }
 0x1c1   :  { %v842_v4 = vpop.f32.mrf.mxu0 }
 0x1c3   :  { %v843_v5 = vpop.f32.mrf.mxu0 }
 0x1c4   :  { %v844_v15 = vadd.f32 %v843_v5, %v842_v4 }
 0x1c5   :  { %v845_v6 = vpop.f32.mrf.mxu0  ;;  %v899_v7 = vpop.f32.mrf.mxu1 }
 0x1c7   :  { %v846_v9 = vpop.f32.mrf.mxu0  ;;  %v684_v11 = vpop.f32.mrf.mxu1 }
 0x1c8   :  { %v847_v38 = vadd.f32 %v846_v9, %v845_v6  ;;  %v685_v12 = vadd.f32 %v841_v8, %v684_v11 }
 0x1c9   :  { %v848_v13 = vpop.f32.mrf.mxu0  ;;  %v900_v14 = vpop.f32.mrf.mxu1 }
 0x1ca   :  { %v693_v16 = vadd.f32 %v899_v7, %v847_v38  ;;  %v706_v17 = vmul.f32 %v783_v10, %v685_v12 }
 0x1cb   :  { %v849_v18 = vpop.f32.mrf.mxu0  ;;  %v687_v19 = vpop.f32.mrf.mxu1 }
 0x1cc   :  { %v708_v20 = vmul.f32 %v783_v10, %v693_v16  ;;  %v717_v21 = vadd.f32 %v784_v36, %v706_v17  ;;  %v850_v24 = vadd.f32 %v849_v18, %v848_v13  ;;  %v688_v25 = vadd.f32 %v844_v15, %v687_v19 }
 0x1ce   :  { %v719_v28 = vadd.f32 %v784_v36, %v708_v20  ;;  %v721_v29 = vadd.f32 %v717_v21, %v1058_v22  ;;  %v696_v30 = vadd.f32 %v900_v14, %v850_v24  ;;  %v707_v31 = vmul.f32 %v783_v10, %v688_v25 }
 0x1d0   :  { %v723_v32 = vadd.f32 %v719_v28, %v1073_v26  ;;  %725 = vst [vmem:[%s1220_s7] sm:$0xff] %v721_v29  ;;  %v709_v33 = vmul.f32 %v783_v10, %v696_v30  ;;  %v718_v34 = vadd.f32 %v784_v36, %v707_v31 }
 0x1d2   :  { %727 = vst [vmem:[%s1220_s7 + $0x10] sm:$0xff] %v723_v32  ;;  %v720_v35 = vadd.f32 %v784_v36, %v709_v33  ;;  %v722_v37 = vadd.f32 %v718_v34, %v1063_v23 }
 0x1d4   :  { %v724_v39 = vadd.f32 %v720_v35, %v1078_v27  ;;  %726 = vst [vmem:[%s1220_s7 + $0x8] sm:$0xff] %v722_v37 }
 0x1d6   :  { %728 = vst [vmem:[%s1220_s7 + $0x18] sm:$0xff] %v724_v39 }

</bundles_post_ra>
